<compile_context>
chip_gen: v6e
topology: v6e:2x2x1
jax: 0.10.0
libtpu: 0.0.40
codegen_flags: <defaults>
</compile_context>

<pallas_src>
import jax
import jax.numpy as jnp
from jax import lax
from jax.experimental import pallas as pl
from jax.experimental.pallas import tpu as pltpu


def _linear_kernel(x_ref, w_ref, b_ref, o_ref, acc_ref):
    # x_ref: (tm, tk)   activations tile
    # w_ref: (C,  tk)   weight tile, native PyTorch layout (contract on dim 1)
    # b_ref: (1,  C)    bias row (f32)
    # o_ref: (tm, C)    output logits tile
    # acc_ref: (tm, C)  f32 accumulator scratch, resident across the k axis
    k = pl.program_id(1)

    @pl.when(k == 0)
    def _init():
        acc_ref[...] = jnp.zeros_like(acc_ref)

    # x @ W^T for this (tm, tk) x (C, tk) pair of tiles -> (tm, C), f32 acc.
    acc_ref[...] += lax.dot_general(
        x_ref[...],
        w_ref[...],
        dimension_numbers=(((1,), (1,)), ((), ())),
        preferred_element_type=jnp.float32,
    )

    @pl.when(k == pl.num_programs(1) - 1)
    def _finalize():
        o_ref[...] = (acc_ref[...] + b_ref[...]).astype(o_ref.dtype)


def _round_up(x, m):
    return (x + m - 1) // m * m


def text_classifier_forward(x, weight, bias, *, tm=128, tk=512,
                            compute_dtype=None):
    """Forward of TextClassifier.

    x:      (B, D)  float features (e.g. CountVectorizer counts)
    weight: (C, D)  PyTorch nn.Linear weight (native layout, NOT transposed)
    bias:   (C,)    PyTorch nn.Linear bias
    compute_dtype: optional dtype for the MXU operand stream (e.g. bf16 on
                   v6e/v7x); accumulation and bias add stay f32.
    """
    B, D = x.shape
    C, D_w = weight.shape
    assert D == D_w, "weight feature dim must match x feature dim"
    out_dtype = x.dtype

    if compute_dtype is not None:
        x = x.astype(compute_dtype)
        weight = weight.astype(compute_dtype)
    bias2d = bias.reshape(1, C).astype(jnp.float32)

    # Pad B/D so tiles obey the (8, 128) constraint and divide the arrays.
    b_pad = _round_up(B, 8)
    d_pad = _round_up(D, 128)
    tm = min(tm, b_pad)
    tk = min(tk, d_pad)
    b_pad = _round_up(b_pad, tm)
    d_pad = _round_up(d_pad, tk)
    if (b_pad, d_pad) != (B, D):
        x = jnp.pad(x, ((0, b_pad - B), (0, d_pad - D)))
    if d_pad != D:
        weight = jnp.pad(weight, ((0, 0), (0, d_pad - D)))

    grid = (b_pad // tm, d_pad // tk)

    out = pl.pallas_call(
        _linear_kernel,
        out_shape=jax.ShapeDtypeStruct((b_pad, C), out_dtype),
        grid=grid,
        in_specs=[
            pl.BlockSpec((tm, tk), lambda i, k: (i, k)),   # activations
            pl.BlockSpec((C, tk), lambda i, k: (0, k)),    # weight (C, D) native
            pl.BlockSpec((1, C), lambda i, k: (0, 0)),     # bias
        ],
        out_specs=pl.BlockSpec((tm, C), lambda i, k: (i, 0)),
        scratch_shapes=[pltpu.VMEM((tm, C), jnp.float32)],
        compiler_params=pltpu.CompilerParams(
            dimension_semantics=("parallel", "arbitrary"),
        ),
    )(x, weight, bias2d)

    return out[:B]


if __name__ == "__main__":
    # Small shapes consistent with the module: bag-of-words features -> logits.
    batch = 8
    input_size = 256       # synthetic CountVectorizer vocabulary size
    num_classes = 16

    key = jax.random.PRNGKey(0)
    kx, kw, kb = jax.random.split(key, 3)

    # Deterministic init mirroring nn.Linear's uniform(-1/sqrt(D), 1/sqrt(D)).
    bound = 1.0 / (input_size ** 0.5)
    weight = jax.random.uniform(kw, (num_classes, input_size), jnp.float32,
                                minval=-bound, maxval=bound)
    bias = jax.random.uniform(kb, (num_classes,), jnp.float32,
                              minval=-bound, maxval=bound)

    # Synthetic count-vector input (non-negative integer counts).
    x = jax.random.randint(kx, (batch, input_size), 0, 4).astype(jnp.float32)

    # --- f32 path, single-tile grid (toy shape) ---
    out = jax.block_until_ready(text_classifier_forward(x, weight, bias))
    ref = x @ weight.T + bias
    assert out.shape == (batch, num_classes)
    assert jnp.allclose(out, ref, atol=1e-5, rtol=1e-5)

    # --- bf16 operand-stream path (v6e/v7x MXU-native), f32 accumulate ---
    out_bf16 = jax.block_until_ready(
        text_classifier_forward(x, weight, bias, compute_dtype=jnp.bfloat16))
    assert jnp.allclose(out_bf16, ref, atol=1e-1, rtol=1e-1)

    # --- exercise the multi-tile reduction + padding path (ragged B, D) ---
    B2, D2 = 136, 1200
    kx2, kw2, kb2 = jax.random.split(jax.random.PRNGKey(1), 3)
    bound2 = 1.0 / (D2 ** 0.5)
    w2 = jax.random.uniform(kw2, (num_classes, D2), jnp.float32,
                            minval=-bound2, maxval=bound2)
    b2 = jax.random.uniform(kb2, (num_classes,), jnp.float32,
                            minval=-bound2, maxval=bound2)
    x2 = jax.random.randint(kx2, (B2, D2), 0, 4).astype(jnp.float32)
    out2 = jax.block_until_ready(text_classifier_forward(x2, w2, b2))
    ref2 = x2 @ w2.T + b2
    assert out2.shape == (B2, num_classes)
    assert jnp.allclose(out2, ref2, atol=1e-4, rtol=1e-4)

    # TODO(synk): CountVectorizer featurization and the training loop are
    # host-side / out of scope for the forward-pass kernel.
    print("KERNEL_OK")
</pallas_src>

<mosaic_0001>
module attributes {stable_mosaic.version = 11 : i64} {
  func.func @_linear_kernel(%arg0: i32, %arg1: i32, %arg2: memref<8x256xf32, #tpu.memory_space<vmem>>, %arg3: memref<16x256xf32, #tpu.memory_space<vmem>>, %arg4: memref<1x16xf32, #tpu.memory_space<vmem>>, %arg5: memref<8x16xf32, #tpu.memory_space<vmem>>, %arg6: memref<8x16xf32, #tpu.memory_space<vmem>>) attributes {dimension_semantics = [#tpu.dimension_semantics<parallel>, #tpu.dimension_semantics<arbitrary>], iteration_bounds = array<i64: 1, 1>, scalar_prefetch = 0 : i64, scratch_operands = 1 : i64, tpu.core_type = #tpu.core_type<tc>, window_params = [{transform_indices = @transform_0, window_bounds = array<i64: 8, 256>}, {transform_indices = @transform_1, window_bounds = array<i64: 16, 256>}, {pipeline_mode = #tpu.pipeline_mode<synchronous>, transform_indices = @transform_2, window_bounds = array<i64: 1, 16>}, {transform_indices = @transform_3, window_bounds = array<i64: 8, 16>}]} {
    %c0_i32 = arith.constant 0 : i32
    %0 = arith.cmpi eq, %arg1, %c0_i32 : i32
    %1 = arith.extui %0 : i1 to i32
    %c0_i32_0 = arith.constant 0 : i32
    %2 = arith.cmpi ne, %1, %c0_i32_0 : i32
    scf.if %2 {
      %cst_10 = arith.constant 0.000000e+00 : f32
      %12 = vector.broadcast %cst_10 : f32 to vector<8x16xf32>
      %c0_11 = arith.constant 0 : index
      %c0_12 = arith.constant 0 : index
      %13 = vector.load %arg6[%c0_11, %c0_12] : memref<8x16xf32, #tpu.memory_space<vmem>>, vector<8x16xf32>
      tpu.vector_store %arg6[%c0_11, %c0_12], %12 {strides = array<i32>} : memref<8x16xf32, #tpu.memory_space<vmem>>, vector<8x16xf32>,
    } else {
    }
    %c0 = arith.constant 0 : index
    %c0_1 = arith.constant 0 : index
    %3 = vector.load %arg6[%c0, %c0_1] : memref<8x16xf32, #tpu.memory_space<vmem>>, vector<8x16xf32>
    %c0_2 = arith.constant 0 : index
    %c0_3 = arith.constant 0 : index
    %4 = vector.load %arg2[%c0_2, %c0_3] : memref<8x256xf32, #tpu.memory_space<vmem>>, vector<8x256xf32>
    %c0_4 = arith.constant 0 : index
    %c0_5 = arith.constant 0 : index
    %5 = vector.load %arg3[%c0_4, %c0_5] : memref<16x256xf32, #tpu.memory_space<vmem>>, vector<16x256xf32>
    %cst = arith.constant dense<0.000000e+00> : vector<8x16xf32>
    %6 = tpu.matmul %4, %5, %cst {dimension_numbers = #tpu.dot_dimension_numbers<[1], [1], [0], [0], [0, 0, 1, 0], [], []>} : vector<8x256xf32>, vector<16x256xf32>, vector<8x16xf32> -> vector<8x16xf32>
    %7 = arith.addf %3, %6 : vector<8x16xf32>
    %c0_6 = arith.constant 0 : index
    %c0_7 = arith.constant 0 : index
    %8 = vector.load %arg6[%c0_6, %c0_7] : memref<8x16xf32, #tpu.memory_space<vmem>>, vector<8x16xf32>
    tpu.vector_store %arg6[%c0_6, %c0_7], %7 {strides = array<i32>} : memref<8x16xf32, #tpu.memory_space<vmem>>, vector<8x16xf32>,
    %c0_i32_8 = arith.constant 0 : i32
    %9 = arith.cmpi eq, %arg1, %c0_i32_8 : i32
    %10 = arith.extui %9 : i1 to i32
    %c0_i32_9 = arith.constant 0 : i32
    %11 = arith.cmpi ne, %10, %c0_i32_9 : i32
    scf.if %11 {
      %c0_10 = arith.constant 0 : index
      %c0_11 = arith.constant 0 : index
      %12 = vector.load %arg6[%c0_10, %c0_11] : memref<8x16xf32, #tpu.memory_space<vmem>>, vector<8x16xf32>
      %c0_12 = arith.constant 0 : index
      %c0_13 = arith.constant 0 : index
      %13 = vector.load %arg4[%c0_12, %c0_13] : memref<1x16xf32, #tpu.memory_space<vmem>>, vector<1x16xf32>
      %14 = vector.broadcast %13 : vector<1x16xf32> to vector<8x16xf32>
      %15 = arith.addf %12, %14 : vector<8x16xf32>
      %c0_14 = arith.constant 0 : index
      %c0_15 = arith.constant 0 : index
      %16 = vector.load %arg5[%c0_14, %c0_15] : memref<8x16xf32, #tpu.memory_space<vmem>>, vector<8x16xf32>
      tpu.vector_store %arg5[%c0_14, %c0_15], %15 {strides = array<i32>} : memref<8x16xf32, #tpu.memory_space<vmem>>, vector<8x16xf32>,
    } else {
    }
    return
  }
  func.func @transform_0(%arg0: i32, %arg1: i32) -> (i32, i32) {
    %c0_i32 = arith.constant 0 : i32
    return %arg0, %arg1 : i32, i32
  }
  func.func @transform_1(%arg0: i32, %arg1: i32) -> (i32, i32) {
    %c0_i32 = arith.constant 0 : i32
    %c0_i32_0 = arith.constant 0 : i32
    return %c0_i32, %arg1 : i32, i32
  }
  func.func @transform_2(%arg0: i32, %arg1: i32) -> (i32, i32) {
    %c0_i32 = arith.constant 0 : i32
    %c0_i32_0 = arith.constant 0 : i32
    %c0_i32_1 = arith.constant 0 : i32
    return %c0_i32, %c0_i32_0 : i32, i32
  }
  func.func @transform_3(%arg0: i32, %arg1: i32) -> (i32, i32) {
    %c0_i32 = arith.constant 0 : i32
    %c0_i32_0 = arith.constant 0 : i32
    return %arg0, %c0_i32 : i32, i32
  }
}

</mosaic_0001>

<bundles_post_ra>
// kernel: tpu_custom_call.1
= control target key start
LH: loop header
LB: loop body
LE: loop exit
PB: predicated region body
PF: predicated region fallthrough
CT: control target
= control target key end

     0   :  { %8 = vsyncpa [#allocation4], 0  ;;  %s270_s0 = inlined_call_operand.hbm [shape: f32[8,256], index: 0, kind: input, shape index: {}]   ;;  %s271_s1 = inlined_call_operand.hbm [shape: f32[16,256], index: 1, kind: input, shape index: {}]   ;;  %s272_s2 = inlined_call_operand.vmem [shape: f32[1,16], index: 2, kind: input, shape index: {}]   ;;  %s273_s3 = inlined_call_operand.hbm [shape: f32[8,16], index: 3, kind: output, shape index: {}]  }
   0x1   :  { %9 = vsyncpa [#allocation7], 0 }
   0x2   :  { %10 = vsyncpa [#allocation5], 0  ;;  %s229_s12 = smov [#allocation3]   ;;  %s230_s14 = smov [#allocation6]  }
   0x3   :  { %s17_s13 = sshll.u32 %s229_s12, 4  ;;  %s26_s15 = sshll.u32 %s230_s14, 4  ;;  %s18_s13 = int_to_ptr.vmem [resolvable:$true] %s17_s13  ;;  %s27_s15 = int_to_ptr.vmem [resolvable:$true] %s26_s15 }
   0x4   :  { %s171_s16 = scalar_lea.vmem %s18_s13, 256  ;;  %p176_p1 = scmp.lt.s32.totalorder %s18_s13, %s18_s13 }
   0x5   :  { %p172_p0 = scmp.ne.s32.totalorder %s18_s13, %s171_s16  ;;  %p177_p2 = scmp.lt.s32.totalorder %s171_s16, %s171_s16 }
   0x7   :  { %p178_p3 = por %p177_p2, %p176_p1 }
   0x9   :  { %p179_p4 = pnand %p178_p3, %p172_p0 }
   0xb   :  { %182 = shalt.err (!%p179_p4)
}
   0xc   :  { %20 = dma.hbm_to_vmem [thread:$0]  %s270_s0, 256, %s18_s13, [#allocation4]  }
   0xd   :  { %s191_s19 = scalar_lea.vmem %s27_s15, 512  ;;  %p196_p6 = scmp.lt.s32.totalorder %s27_s15, %s27_s15 }
   0xe   :  { %p192_p5 = scmp.ne.s32.totalorder %s27_s15, %s191_s19  ;;  %p197_p7 = scmp.lt.s32.totalorder %s191_s19, %s191_s19 }
  0x10   :  { %p198_p8 = por %p197_p7, %p196_p6 }
  0x12   :  { %p199_p9 = pnand %p198_p8, %p192_p5 }
  0x14   :  { %202 = shalt.err (!%p199_p9)
}
  0x15   :  { %s231_s20 = smov 256   ;;  %s232_s21 = smov 16  }
  0x16   :  { %32 = dma.hbm_to_vmem [thread:$0]  %s271_s1, 512, %s27_s15, [#allocation7], %s231_s20, %s231_s20, %s232_s21  }
  0x17   :  { %223 = dma.done.wait [#allocation4], 256  }
  0x18   :  { %224 = vsyncadd [#allocation4], 4294967040 }
  0x19   :  { %225 = dma.done.wait [#allocation7], 512  }
  0x1a   :  { %226 = vsyncadd [#allocation7], 4294966784  ;;  %vm45_vm0 = vcmask 130048   ;;  %v233_v0 = vmov 0.0   ;;  %v53_v1 = vld [vmem:[#allocation6 + $0x18] sm:$0xff]  ;;  %v52_v2 = vld [vmem:[#allocation6 + $0x10] sm:$0xff] }
  0x1b   :  { %46 = vst.msk [vmem:[#allocation2] sm:$0xff] %vm45_vm0, %v233_v0  ;;  %v51_v3 = vld [vmem:[#allocation6 + $0x8] sm:$0xff]  ;;  %82 = vmatprep.subr.mxu0 %v53_v1  ;;  %v49_v4 = vld [vmem:[#allocation3 + $0x8] sm:$0xff]  ;;  %v50_v5 = vld [vmem:[#allocation6] sm:$0xff]  ;;  %s234_s24 = smov [#allocation8]  }
  0x1c   :  { %83 = vmatpush1.xpose.msra.mxu0 %v52_v2  ;;  %118 = vmatprep.mubr.f32.mxu0 %v49_v4  ;;  %v48_v6 = vld [vmem:[#allocation3] sm:$0xff]  ;;  %v156_v11 = vld [vmem:[%s272_s2] ss:$0 sm:$0xff]  ;;  %s146_s25 = sshll.u32 %s234_s24, 4  ;;  %s147_s25 = int_to_ptr.vmem [resolvable:$true] %s146_s25 }
  0x1d   :  { %84 = vmatprep.subr.mxu0 %v51_v3  ;;  %s203_s26 = scalar_lea.vmem %s147_s25, 128  ;;  %p208_p11 = scmp.lt.s32.totalorder %s147_s25, %s147_s25 }
  0x1e   :  { %p204_p10 = scmp.ne.s32.totalorder %s147_s25, %s203_s26  ;;  %p209_p12 = scmp.lt.s32.totalorder %s203_s26, %s203_s26 }
  0x20   :  { %85 = vmatpush1.xpose.msra.mxu0 %v50_v5  ;;  %p210_p13 = por %p209_p12, %p208_p11 }
  0x22   :  { %v47_v7 = vld [vmem:[#allocation2] sm:$0xff]  ;;  %p211_p0 = pnand %p210_p13, %p204_p10 }
  0x23   :  { %119 = vmatmul.mubr.f32.vlgmr.msra.gmra.mxu0 %v48_v6 }
  0xe3   :  { %v120_v8 = vpop.f32.mrf.mxu0 }
  0xe4   :  { %v124_v9 = vadd.f32 %v120_v8, %v47_v7 }
  0xe5   :  { %v122_v10 = vpop.f32.mrf.mxu0 }
  0xe6   :  { %126 = vst.msk [vmem:[#allocation2] sm:$0xff] %vm45_vm0, %v124_v9 }
  0xed   :  { %v130_v12 = vld [vmem:[#allocation2] sm:$0xff] }
  0xee   :  { %v138_v13 = vadd.f32 %v156_v11, %v130_v12 }
  0xf0   :  { %139 = vst.msk [vmem:[#allocation8] sm:$0xff] %vm45_vm0, %v138_v13 }
  0xf1   :  { %214 = shalt.err (!%p211_p0)
}
  0xf2   :  { %149 = dma.vmem_to_hbm [thread:$0]  %s147_s25, 128, %s273_s3, [#allocation5]  }
  0xf3   :  { %227 = dma.done.wait [#allocation5], 128  }
  0xf4   :  { %228 = vsyncadd [#allocation5], 4294967168 }
  0xf5   :  { %153 = vsyncpa [#allocation4], 1 }
  0xf6   :  { %154 = vsyncpa [#allocation7], 1 }
  0xf7   :  { %155 = vsyncpa [#allocation5], 1 }

</bundles_post_ra>
